<compile_context>
chip_gen: v5e
topology: v5e:2x2
jax: 0.10.0
libtpu: 0.0.40
codegen_flags: <defaults>
</compile_context>

<pallas_src>
import jax
import jax.numpy as jnp
from jax.experimental import pallas as pl
from jax.experimental.pallas import tpu as pltpu

_LANE = 128


def _round_up(n, m):
    return ((n + m - 1) // m) * m


def model_with_se_kernel(x_ref, w1_ref, b1_ref, w2_ref, b2_ref,
                         wse1_ref, wse2_ref, wf_ref, bf_ref, out_ref):
    # All matmuls: bf16 operands on the MXU, f32 accumulation.
    # All elementwise math: f32 on the VPU.
    x = x_ref[...]                                                    # (TB, in) f32

    # SEMLP: h1 = relu(x @ W1 + b1); h2 = h1 @ W2 + b2   (hidden lane-padded, exact)
    h1 = jnp.dot(x.astype(jnp.bfloat16), w1_ref[...],
                 preferred_element_type=jnp.float32) + b1_ref[...]
    h1 = jnp.maximum(h1, 0.0)
    h2 = jnp.dot(h1.astype(jnp.bfloat16), w2_ref[...],
                 preferred_element_type=jnp.float32) + b2_ref[...]

    # SELayer on (B, C, 1, 1): AdaptiveAvgPool2d(1) over a 1x1 spatial extent is the
    # identity, so the SE branch is two dense matmuls on (TB, C).
    s = jnp.dot(h2.astype(jnp.bfloat16), wse1_ref[...],
                preferred_element_type=jnp.float32)
    s = jnp.maximum(s, 0.0)
    y = jax.nn.sigmoid(jnp.dot(s.astype(jnp.bfloat16), wse2_ref[...],
                               preferred_element_type=jnp.float32))
    gated = h2 * y           # padded hidden cols: 0 * sigmoid(0) = 0  -> still exact

    # final_fc (output columns zero-padded to 128 lanes -> lane-dense, unmasked store;
    # padding is sliced off in the wrapper).
    out_ref[...] = (jnp.dot(gated.astype(jnp.bfloat16), wf_ref[...],
                            preferred_element_type=jnp.float32)
                    + bf_ref[...])


def model_with_se_forward(x, params, *, block_b=128):
    """x: (B, input_dim) f32. params: bf16 weights (pre-transposed to (in, out)),
    f32 biases of shape (1, dim). Returns (B, output_dim) f32."""
    B, in_dim = x.shape
    hidden = params["w1"].shape[1]
    se_hidden = params["wse1"].shape[1]
    output_dim = params["wf"].shape[1]

    # Lane-pad hidden, SE bottleneck and output dims (zero padding is exact; no-op
    # when the dim is already a multiple of 128).
    hid_pad = _round_up(hidden, _LANE)
    se_pad = _round_up(se_hidden, _LANE)
    out_pad = _round_up(output_dim, _LANE)
    dh, ds, do = hid_pad - hidden, se_pad - se_hidden, out_pad - output_dim

    w1 = jnp.pad(params["w1"], ((0, 0), (0, dh)))
    b1 = jnp.pad(params["b1"], ((0, 0), (0, dh)))
    w2 = jnp.pad(params["w2"], ((0, dh), (0, dh)))
    b2 = jnp.pad(params["b2"], ((0, 0), (0, dh)))
    wse1 = jnp.pad(params["wse1"], ((0, dh), (0, ds)))
    wse2 = jnp.pad(params["wse2"], ((0, ds), (0, dh)))
    wf = jnp.pad(params["wf"], ((0, dh), (0, do)))
    bf = jnp.pad(params["bf"], ((0, 0), (0, do)))

    # Batch tiling: TB a multiple of 8 sublanes (128 aligns with the MXU); pad B to a
    # multiple of TB, slice the extra rows off afterwards.
    tb = min(block_b, _round_up(B, 8))
    b_pad = _round_up(B, tb)
    x_p = jnp.pad(x, ((0, b_pad - B), (0, 0))) if b_pad != B else x

    def resident(shape):   # weights/biases: DMA'd once, stay resident in VMEM
        return pl.BlockSpec(shape, lambda i: (0, 0))

    out = pl.pallas_call(
        model_with_se_kernel,
        out_shape=jax.ShapeDtypeStruct((b_pad, out_pad), jnp.float32),
        grid=(b_pad // tb,),
        in_specs=[
            pl.BlockSpec((tb, in_dim), lambda i: (i, 0)),   # streamed x tile
            resident(w1.shape),
            resident(b1.shape),
            resident(w2.shape),
            resident(b2.shape),
            resident(wse1.shape),
            resident(wse2.shape),
            resident(wf.shape),
            resident(bf.shape),
        ],
        out_specs=pl.BlockSpec((tb, out_pad), lambda i: (i, 0)),
        compiler_params=pltpu.CompilerParams(
            dimension_semantics=("parallel",),       # megacore-shard batch on v7x
            vmem_limit_bytes=64 * 1024 * 1024),
    )(x_p, w1, b1, w2, b2, wse1, wse2, wf, bf)

    return out[:B, :output_dim]


def init_params(key, input_dim, hidden_dim, output_dim, reduction=16):
    """Deterministic synthetic init. Weights pre-transposed to (in, out) and stored
    in bf16 (matmul operands); biases stored in f32 (elementwise adds)."""
    se_hidden = max(hidden_dim // reduction, 1)
    ks = jax.random.split(key, 8)
    scale = 0.1

    def w(k, shape):
        return (scale * jax.random.normal(k, shape, jnp.float32)).astype(jnp.bfloat16)

    def b(k, shape):
        return scale * jax.random.normal(k, shape, jnp.float32)

    return {
        "w1":   w(ks[0], (input_dim, hidden_dim)),
        "b1":   b(ks[1], (1, hidden_dim)),
        "w2":   w(ks[2], (hidden_dim, hidden_dim)),
        "b2":   b(ks[3], (1, hidden_dim)),
        "wse1": w(ks[4], (hidden_dim, se_hidden)),
        "wse2": w(ks[5], (se_hidden, hidden_dim)),
        "wf":   w(ks[6], (hidden_dim, output_dim)),
        "bf":   b(ks[7], (1, output_dim)),
    }


def reference_forward(x, p):
    """Pure-JAX reference with the same bf16-operand / f32-accumulation numerics."""
    def mm(a, w):
        return jnp.dot(a.astype(jnp.bfloat16), w.astype(jnp.bfloat16),
                       preferred_element_type=jnp.float32)
    h1 = jax.nn.relu(mm(x, p["w1"]) + p["b1"])
    h2 = mm(h1, p["w2"]) + p["b2"]
    y = jax.nn.sigmoid(mm(jax.nn.relu(mm(h2, p["wse1"])), p["wse2"]))
    return mm(h2 * y, p["wf"]) + p["bf"]


if __name__ == "__main__":
    # hidden_dim // 16 = 2 -> SE bottleneck; B=256 exercises 2 batch tiles (TB=128).
    B, input_dim, hidden_dim, output_dim = 256, 16, 32, 8
    key = jax.random.PRNGKey(0)
    kx, kp = jax.random.split(key)
    x = jax.random.normal(kx, (B, input_dim), jnp.float32)
    params = init_params(kp, input_dim, hidden_dim, output_dim)

    fwd = jax.jit(model_with_se_forward)   # fuse the (tiny) padding ops + one dispatch
    out = jax.block_until_ready(fwd(x, params))

    ref = reference_forward(x, params)
    assert out.shape == (B, output_dim)
    assert jnp.allclose(out, ref, atol=1e-3, rtol=1e-3), float(jnp.max(jnp.abs(out - ref)))
    print("KERNEL_OK")
</pallas_src>

<mosaic_0001>
module attributes {stable_mosaic.version = 11 : i64} {
  func.func @model_with_se_kernel(%arg0: i32, %arg1: memref<128x16xf32, #tpu.memory_space<vmem>>, %arg2: memref<16x128xbf16, #tpu.memory_space<vmem>>, %arg3: memref<1x128xf32, #tpu.memory_space<vmem>>, %arg4: memref<128x128xbf16, #tpu.memory_space<vmem>>, %arg5: memref<1x128xf32, #tpu.memory_space<vmem>>, %arg6: memref<128x128xbf16, #tpu.memory_space<vmem>>, %arg7: memref<128x128xbf16, #tpu.memory_space<vmem>>, %arg8: memref<128x128xbf16, #tpu.memory_space<vmem>>, %arg9: memref<1x128xf32, #tpu.memory_space<vmem>>, %arg10: memref<128x128xf32, #tpu.memory_space<vmem>>) attributes {dimension_semantics = [#tpu.dimension_semantics<parallel>], iteration_bounds = array<i64: 2>, scalar_prefetch = 0 : i64, scratch_operands = 0 : i64, tpu.core_type = #tpu.core_type<tc>, window_params = [{transform_indices = @transform_0, window_bounds = array<i64: 128, 16>}, {pipeline_mode = #tpu.pipeline_mode<synchronous>, transform_indices = @transform_1, window_bounds = array<i64: 16, 128>}, {pipeline_mode = #tpu.pipeline_mode<synchronous>, transform_indices = @transform_2, window_bounds = array<i64: 1, 128>}, {pipeline_mode = #tpu.pipeline_mode<synchronous>, transform_indices = @transform_3, window_bounds = array<i64: 128, 128>}, {pipeline_mode = #tpu.pipeline_mode<synchronous>, transform_indices = @transform_4, window_bounds = array<i64: 1, 128>}, {pipeline_mode = #tpu.pipeline_mode<synchronous>, transform_indices = @transform_5, window_bounds = array<i64: 128, 128>}, {pipeline_mode = #tpu.pipeline_mode<synchronous>, transform_indices = @transform_6, window_bounds = array<i64: 128, 128>}, {pipeline_mode = #tpu.pipeline_mode<synchronous>, transform_indices = @transform_7, window_bounds = array<i64: 128, 128>}, {pipeline_mode = #tpu.pipeline_mode<synchronous>, transform_indices = @transform_8, window_bounds = array<i64: 1, 128>}, {transform_indices = @transform_9, window_bounds = array<i64: 128, 128>}]} {
    %c0 = arith.constant 0 : index
    %c0_0 = arith.constant 0 : index
    %0 = vector.load %arg1[%c0, %c0_0] : memref<128x16xf32, #tpu.memory_space<vmem>>, vector<128x16xf32>
    %1 = arith.truncf %0 : vector<128x16xf32> to vector<128x16xbf16>
    %c0_1 = arith.constant 0 : index
    %c0_2 = arith.constant 0 : index
    %2 = vector.load %arg2[%c0_1, %c0_2] : memref<16x128xbf16, #tpu.memory_space<vmem>>, vector<16x128xbf16>
    %cst = arith.constant dense<0.000000e+00> : vector<128x128xf32>
    %3 = tpu.matmul %1, %2, %cst {dimension_numbers = #tpu.dot_dimension_numbers<[1], [0], [0], [1], [0, 0, 1, 1], [], []>} : vector<128x16xbf16>, vector<16x128xbf16>, vector<128x128xf32> -> vector<128x128xf32>
    %c0_3 = arith.constant 0 : index
    %c0_4 = arith.constant 0 : index
    %4 = vector.load %arg3[%c0_3, %c0_4] : memref<1x128xf32, #tpu.memory_space<vmem>>, vector<1x128xf32>
    %5 = vector.broadcast %4 : vector<1x128xf32> to vector<128x128xf32>
    %6 = arith.addf %3, %5 : vector<128x128xf32>
    %cst_5 = arith.constant 0.000000e+00 : f32
    %7 = vector.broadcast %cst_5 : f32 to vector<128x128xf32>
    %8 = arith.maximumf %6, %7 : vector<128x128xf32>
    %9 = arith.truncf %8 : vector<128x128xf32> to vector<128x128xbf16>
    %c0_6 = arith.constant 0 : index
    %c0_7 = arith.constant 0 : index
    %10 = vector.load %arg4[%c0_6, %c0_7] : memref<128x128xbf16, #tpu.memory_space<vmem>>, vector<128x128xbf16>
    %cst_8 = arith.constant dense<0.000000e+00> : vector<128x128xf32>
    %11 = tpu.matmul %9, %10, %cst_8 {dimension_numbers = #tpu.dot_dimension_numbers<[1], [0], [0], [1], [0, 0, 1, 1], [], []>} : vector<128x128xbf16>, vector<128x128xbf16>, vector<128x128xf32> -> vector<128x128xf32>
    %c0_9 = arith.constant 0 : index
    %c0_10 = arith.constant 0 : index
    %12 = vector.load %arg5[%c0_9, %c0_10] : memref<1x128xf32, #tpu.memory_space<vmem>>, vector<1x128xf32>
    %13 = vector.broadcast %12 : vector<1x128xf32> to vector<128x128xf32>
    %14 = arith.addf %11, %13 : vector<128x128xf32>
    %15 = arith.truncf %14 : vector<128x128xf32> to vector<128x128xbf16>
    %c0_11 = arith.constant 0 : index
    %c0_12 = arith.constant 0 : index
    %16 = vector.load %arg6[%c0_11, %c0_12] : memref<128x128xbf16, #tpu.memory_space<vmem>>, vector<128x128xbf16>
    %cst_13 = arith.constant dense<0.000000e+00> : vector<128x128xf32>
    %17 = tpu.matmul %15, %16, %cst_13 {dimension_numbers = #tpu.dot_dimension_numbers<[1], [0], [0], [1], [0, 0, 1, 1], [], []>} : vector<128x128xbf16>, vector<128x128xbf16>, vector<128x128xf32> -> vector<128x128xf32>
    %cst_14 = arith.constant 0.000000e+00 : f32
    %18 = vector.broadcast %cst_14 : f32 to vector<128x128xf32>
    %19 = arith.maximumf %17, %18 : vector<128x128xf32>
    %20 = arith.truncf %19 : vector<128x128xf32> to vector<128x128xbf16>
    %c0_15 = arith.constant 0 : index
    %c0_16 = arith.constant 0 : index
    %21 = vector.load %arg7[%c0_15, %c0_16] : memref<128x128xbf16, #tpu.memory_space<vmem>>, vector<128x128xbf16>
    %cst_17 = arith.constant dense<0.000000e+00> : vector<128x128xf32>
    %22 = tpu.matmul %20, %21, %cst_17 {dimension_numbers = #tpu.dot_dimension_numbers<[1], [0], [0], [1], [0, 0, 1, 1], [], []>} : vector<128x128xbf16>, vector<128x128xbf16>, vector<128x128xf32> -> vector<128x128xf32>
    %23 = arith.negf %22 : vector<128x128xf32>
    %24 = math.exp %23 : vector<128x128xf32>
    %cst_18 = arith.constant 1.000000e+00 : f32
    %25 = vector.broadcast %cst_18 : f32 to vector<128x128xf32>
    %26 = arith.addf %25, %24 : vector<128x128xf32>
    %27 = arith.divf %25, %26 : vector<128x128xf32>
    %28 = arith.mulf %14, %27 : vector<128x128xf32>
    %29 = arith.truncf %28 : vector<128x128xf32> to vector<128x128xbf16>
    %c0_19 = arith.constant 0 : index
    %c0_20 = arith.constant 0 : index
    %30 = vector.load %arg8[%c0_19, %c0_20] : memref<128x128xbf16, #tpu.memory_space<vmem>>, vector<128x128xbf16>
    %cst_21 = arith.constant dense<0.000000e+00> : vector<128x128xf32>
    %31 = tpu.matmul %29, %30, %cst_21 {dimension_numbers = #tpu.dot_dimension_numbers<[1], [0], [0], [1], [0, 0, 1, 1], [], []>} : vector<128x128xbf16>, vector<128x128xbf16>, vector<128x128xf32> -> vector<128x128xf32>
    %c0_22 = arith.constant 0 : index
    %c0_23 = arith.constant 0 : index
    %32 = vector.load %arg9[%c0_22, %c0_23] : memref<1x128xf32, #tpu.memory_space<vmem>>, vector<1x128xf32>
    %33 = vector.broadcast %32 : vector<1x128xf32> to vector<128x128xf32>
    %34 = arith.addf %31, %33 : vector<128x128xf32>
    %c0_24 = arith.constant 0 : index
    %c0_25 = arith.constant 0 : index
    %35 = vector.load %arg10[%c0_24, %c0_25] : memref<128x128xf32, #tpu.memory_space<vmem>>, vector<128x128xf32>
    tpu.vector_store %arg10[%c0_24, %c0_25], %34 {strides = array<i32>} : memref<128x128xf32, #tpu.memory_space<vmem>>, vector<128x128xf32>,
    return
  }
  func.func @transform_0(%arg0: i32) -> (i32, i32) {
    %c0_i32 = arith.constant 0 : i32
    %c0_i32_0 = arith.constant 0 : i32
    return %arg0, %c0_i32 : i32, i32
  }
  func.func @transform_1(%arg0: i32) -> (i32, i32) {
    %c0_i32 = arith.constant 0 : i32
    %c0_i32_0 = arith.constant 0 : i32
    %c0_i32_1 = arith.constant 0 : i32
    return %c0_i32, %c0_i32_0 : i32, i32
  }
  func.func @transform_2(%arg0: i32) -> (i32, i32) {
    %c0_i32 = arith.constant 0 : i32
    %c0_i32_0 = arith.constant 0 : i32
    %c0_i32_1 = arith.constant 0 : i32
    return %c0_i32, %c0_i32_0 : i32, i32
  }
  func.func @transform_3(%arg0: i32) -> (i32, i32) {
    %c0_i32 = arith.constant 0 : i32
    %c0_i32_0 = arith.constant 0 : i32
    %c0_i32_1 = arith.constant 0 : i32
    return %c0_i32, %c0_i32_0 : i32, i32
  }
  func.func @transform_4(%arg0: i32) -> (i32, i32) {
    %c0_i32 = arith.constant 0 : i32
    %c0_i32_0 = arith.constant 0 : i32
    %c0_i32_1 = arith.constant 0 : i32
    return %c0_i32, %c0_i32_0 : i32, i32
  }
  func.func @transform_5(%arg0: i32) -> (i32, i32) {
    %c0_i32 = arith.constant 0 : i32
    %c0_i32_0 = arith.constant 0 : i32
    %c0_i32_1 = arith.constant 0 : i32
    return %c0_i32, %c0_i32_0 : i32, i32
  }
  func.func @transform_6(%arg0: i32) -> (i32, i32) {
    %c0_i32 = arith.constant 0 : i32
    %c0_i32_0 = arith.constant 0 : i32
    %c0_i32_1 = arith.constant 0 : i32
    return %c0_i32, %c0_i32_0 : i32, i32
  }
  func.func @transform_7(%arg0: i32) -> (i32, i32) {
    %c0_i32 = arith.constant 0 : i32
    %c0_i32_0 = arith.constant 0 : i32
    %c0_i32_1 = arith.constant 0 : i32
    return %c0_i32, %c0_i32_0 : i32, i32
  }
  func.func @transform_8(%arg0: i32) -> (i32, i32) {
    %c0_i32 = arith.constant 0 : i32
    %c0_i32_0 = arith.constant 0 : i32
    %c0_i32_1 = arith.constant 0 : i32
    return %c0_i32, %c0_i32_0 : i32, i32
  }
  func.func @transform_9(%arg0: i32) -> (i32, i32) {
    %c0_i32 = arith.constant 0 : i32
    %c0_i32_0 = arith.constant 0 : i32
    return %arg0, %c0_i32 : i32, i32
  }
}

</mosaic_0001>

<bundles_post_ra>
// kernel: model_with_se_forward.1
= control target key start
LH: loop header
LB: loop body
LE: loop exit
PB: predicated region body
PF: predicated region fallthrough
CT: control target
= control target key end

     0   :  { %s1699_s30 = smov 0   ;;  %s2028_s0 = inlined_call_operand.vmem [shape: f32[256,16], index: 0, kind: input, shape index: {}]   ;;  %s2029_s1 = inlined_call_operand.vmem [shape: bf16[16,128], index: 1, kind: input, shape index: {}]   ;;  %s2030_s2 = inlined_call_operand.vmem [shape: f32[1,128], index: 2, kind: input, shape index: {}]   ;;  %s2031_s3 = inlined_call_operand.vmem [shape: bf16[128,128], index: 3, kind: input, shape index: {}]   ;;  %s2032_s4 = inlined_call_operand.vmem [shape: f32[1,128], index: 4, kind: input, shape index: {}]   ;;  %s2033_s5 = inlined_call_operand.vmem [shape: bf16[128,128], index: 5, kind: input, shape index: {}]   ;;  %s2034_s6 = inlined_call_operand.vmem [shape: bf16[128,128], index: 6, kind: input, shape index: {}]   ;;  %s2035_s7 = inlined_call_operand.vmem [shape: bf16[128,128], index: 7, kind: input, shape index: {}]   ;;  %s2036_s8 = inlined_call_operand.vmem [shape: f32[1,128], index: 8, kind: input, shape index: {}]   ;;  %s2037_s9 = inlined_call_operand.vmem [shape: f32[256,128], index: 9, kind: output, shape index: {}]  }
   0x1 LB: > { %s1363_s10 = sadd.s32 4294967295, %s1647_s30   ;;  %p1367_p0 = scmp.ge.s32.totalorder %s1647_s30, 1  ;;  %s1647_s30 = sphi %s1699_s30, %s19_s30  }
   0x2   : > { %p288_p1 = scmp.lt.s32.totalorder %s1647_s30, 3 }
   0x4   : > { %p289_p2 = pnand %p1367_p0, %p288_p1 }
   0x5   : > { %s1368_s13 = sshll.u32 (!%p289_p2), %s1363_s10, 4 }
   0x6   : > { %292 = sbr.rel (%p289_p2) target bundleno = 860 (0x35c), region = 56  ;;  %p325_p3 = scmp.lt.s32.totalorder (!%p289_p2), %s1368_s13, 31 }
   0xb   : > { %v1530_v0 = vld [vmem:[%s2029_s1] sm:$0xff]  ;;  %s2051_s13 = smov (!%p325_p3, %s1368_s13), 31  ;;  %vm373_vm0 = vcmask 130048   ;;  %v1538_v12 = vld [vmem:[%s2031_s3 + $0x38] sm:$0xff]  ;;  %v1537_v14 = vld [vmem:[%s2031_s3 + $0x30] sm:$0xff] }
   0xc   : > { %405 = vmatpush.bf16.msra.mxu0 %v1530_v0  ;;  %1563 = vmatpush.bf16.msra.mxu1 %v1530_v0  ;;  %s1369_s14 = sshll.u32 %s2051_s13, 3  ;;  %v1536_v17 = vld [vmem:[%s2031_s3 + $0x28] sm:$0xff]  ;;  %v1535_v24 = vld [vmem:[%s2031_s3 + $0x20] sm:$0xff]  ;;  %v1534_v26 = vld [vmem:[%s2031_s3 + $0x18] sm:$0xff] }
   0xd   : > { %1564 = vmatpush.bf16.msra.mxu2 %v1530_v0  ;;  %1565 = vmatpush.bf16.msra.mxu3 %v1530_v0  ;;  %s1718_s17 = scalar_lea.vmem %s2028_s0, %s1369_s14  ;;  %v1533_v30 = vld [vmem:[%s2031_s3 + $0x10] sm:$0xff]  ;;  %v1532_v31 = vld [vmem:[%s2031_s3 + $0x8] sm:$0xff]  ;;  %v1531_v32 = vld [vmem:[%s2031_s3] sm:$0xff]  ;;  %s2007_s18 = scalar_lea.vmem %s2037_s9, %s1369_s14 }
   0xe   : > { %v337_v1 = vld [vmem:[%s1718_s17] sm:$0xff]  ;;  %v338_v2 = vld [vmem:[%s1718_s17 + $0x8] sm:$0xff]  ;;  %v351_v10 = vld [vmem:[%s1718_s17 + $0x70] sm:$0xff] }
   0xf   : > { %v353_v3 = vpack.c.bf16 %v338_v2, %v337_v1  ;;  %v341_v4 = vld [vmem:[%s1718_s17 + $0x20] sm:$0xff]  ;;  %v342_v5 = vld [vmem:[%s1718_s17 + $0x28] sm:$0xff]  ;;  %v352_v11 = vld [vmem:[%s1718_s17 + $0x78] sm:$0xff] }
  0x10   : > { %v355_v6 = vpack.c.bf16 %v342_v5, %v341_v4  ;;  %v345_v7 = vld [vmem:[%s1718_s17 + $0x40] sm:$0xff]  ;;  %v346_v8 = vld [vmem:[%s1718_s17 + $0x48] sm:$0xff]  ;;  %v360_v13 = vpack.c.bf16 %v352_v11, %v351_v10  ;;  %539 = vmatpush.bf16.msrb.mxu1 %v1538_v12  ;;  %v339_v15 = vld [vmem:[%s1718_s17 + $0x10] sm:$0xff] }
  0x11   : > { %1376 = vmatmul.msk.bf16.vlgmr.msra.gmra.mxu0 %vm373_vm0, %v353_v3  ;;  %v357_v9 = vpack.c.bf16 %v346_v8, %v345_v7  ;;  %v340_v16 = vld [vmem:[%s1718_s17 + $0x18] sm:$0xff]  ;;  %v343_v18 = vld [vmem:[%s1718_s17 + $0x30] sm:$0xff]  ;;  %v349_v27 = vld [vmem:[%s1718_s17 + $0x60] sm:$0xff] }
  0x12   : > { %1378 = vmatmul.msk.bf16.vlgmr.msra.gmra.mxu1 %vm373_vm0, %v355_v6  ;;  %1383 = vmatmul.msk.bf16.vlgmr.msra.gmra.mxu3 %vm373_vm0, %v360_v13  ;;  %v344_v19 = vld [vmem:[%s1718_s17 + $0x38] sm:$0xff]  ;;  %v354_v20 = vpack.c.bf16 %v340_v16, %v339_v15  ;;  %v347_v21 = vld [vmem:[%s1718_s17 + $0x50] sm:$0xff]  ;;  %v350_v28 = vld [vmem:[%s1718_s17 + $0x68] sm:$0xff] }
  0x13   : > { %1380 = vmatmul.msk.bf16.vlgmr.msra.gmra.mxu2 %vm373_vm0, %v357_v9  ;;  %v348_v22 = vld [vmem:[%s1718_s17 + $0x58] sm:$0xff]  ;;  %v356_v23 = vpack.c.bf16 %v344_v19, %v343_v18  ;;  %v359_v29 = vpack.c.bf16 %v350_v28, %v349_v27  ;;  %v1771_v34 = vld [vmem:[%s2030_s2] ss:$0 sm:$0xff]  ;;  %v1545_v8 = vld [vmem:[%s2033_s5 + $0x30] sm:$0xff] }
  0x14   : > { %540 = vmatpush.bf16.msrb.mxu1 %v1537_v14  ;;  %v358_v25 = vpack.c.bf16 %v348_v22, %v347_v21  ;;  %v1546_v0 = vld [vmem:[%s2033_s5 + $0x38] sm:$0xff]  ;;  %v1544_v9 = vld [vmem:[%s2033_s5 + $0x28] sm:$0xff]  ;;  %v1543_v12 = vld [vmem:[%s2033_s5 + $0x20] sm:$0xff] }
  0x15   : > { %660 = vmatpush.bf16.msrb.mxu2 %v1546_v0  ;;  %v1541_v18 = vld [vmem:[%s2033_s5 + $0x10] sm:$0xff]  ;;  %v1539_v27 = vld [vmem:[%s2033_s5] sm:$0xff] }
  0x18   : > { %541 = vmatpush.bf16.msrb.mxu1 %v1536_v17  ;;  %v1542_v17 = vld [vmem:[%s2033_s5 + $0x18] sm:$0xff] }
  0x19   : > { %661 = vmatpush.bf16.msrb.mxu2 %v1545_v8 }
  0x1c   : > { %542 = vmatpush.bf16.msrb.mxu1 %v1535_v24 }
  0x1d   : > { %662 = vmatpush.bf16.msrb.mxu2 %v1544_v9  ;;  %v1550_v9 = vld [vmem:[%s2034_s6 + $0x18] sm:$0xff] }
  0x20   : > { %543 = vmatpush.bf16.msrb.mxu1 %v1534_v26  ;;  %v1540_v26 = vld [vmem:[%s2033_s5 + $0x8] sm:$0xff] }
  0x21   : > { %1377 = vmatmul.msk.bf16.gmra.mxu0 %vm373_vm0, %v354_v20  ;;  %663 = vmatpush.bf16.msrb.mxu2 %v1543_v12  ;;  %v1549_v12 = vld [vmem:[%s2034_s6 + $0x10] sm:$0xff] }
  0x22   : > { %1379 = vmatmul.msk.bf16.gmra.mxu1 %vm373_vm0, %v356_v23 }
  0x23   : > { %1381 = vmatmul.msk.bf16.gmra.mxu2 %vm373_vm0, %v358_v25 }
  0x24   : > { %544 = vmatpush.bf16.msrb.mxu1 %v1533_v30 }
  0x25   : > { %664 = vmatpush.bf16.msrb.mxu2 %v1542_v17 }
  0x28   : > { %545 = vmatpush.bf16.msrb.mxu1 %v1532_v31 }
  0x29   : > { %665 = vmatpush.bf16.msrb.mxu2 %v1541_v18 }
  0x2c   : > { %546 = vmatpush.bf16.msrb.mxu1 %v1531_v32 }
  0x2d   : > { %666 = vmatpush.bf16.msrb.mxu2 %v1540_v26 }
  0x31   : > { %667 = vmatpush.bf16.msrb.mxu2 %v1539_v27 }
  0x33   : > { %1382 = vmatmul.msk.bf16.gmra.mxu2 %vm373_vm0, %v359_v29 }
  0x8e   : > { %v407_v33 = vpop.f32.mrf.mxu0 }
  0x8f   : > { %v408_v35 = vadd.f32 %v1771_v34, %v407_v33  ;;  %v417_v42 = vpop.f32.mrf.mxu1 }
  0x90   : > { %v418_v50 = vadd.f32 %v1771_v34, %v417_v42 }
  0x91   : > { %v447_v38 = vmax.f32 %v408_v35, 0.0 }
  0x92   : > { %v451_v53 = vmax.f32 %v418_v50, 0.0 }
  0x95   : > { %v442_v22 = vpop.f32.mrf.mxu3 }
  0x96   : > { %v409_v36 = vpop.f32.mrf.mxu0  ;;  %v427_v56 = vpop.f32.mrf.mxu2  ;;  %v443_v29 = vadd.f32 %v1771_v34, %v442_v22 }
  0x97   : > { %v410_v37 = vadd.f32 %v1771_v34, %v409_v36  ;;  %v419_v49 = vpop.f32.mrf.mxu1  ;;  %v428_v2 = vadd.f32 %v1771_v34, %v427_v56  ;;  %v1575_v36 = vld [vmem:[%s2032_s4] ss:$0 sm:$0xff] }
  0x98   : > { %v420_v51 = vadd.f32 %v1771_v34, %v419_v49  ;;  %v461_v31 = vmax.f32 %v443_v29, 0.0 }
  0x99   : > { %v448_v39 = vmax.f32 %v410_v37, 0.0  ;;  %v455_v4 = vmax.f32 %v428_v2, 0.0  ;;  %v1553_v2 = vld [vmem:[%s2034_s6 + $0x30] sm:$0xff] }
  0x9a   : > { %v452_v54 = vmax.f32 %v420_v51, 0.0 }
  0x9b   : > { %v463_v40 = vpack.c.bf16 %v448_v39, %v447_v38 }
  0x9c   : > { %v465_v55 = vpack.c.bf16 %v452_v54, %v451_v53 }
  0x9d   : > { %547 = vmatmul.bf16.vlgmr.msrb.gmra.mxu1 %v463_v40  ;;  %v444_v28 = vpop.f32.mrf.mxu3 }
  0x9e   : > { %v412_v41 = vpop.f32.mrf.mxu0  ;;  %v429_v62 = vpop.f32.mrf.mxu2  ;;  %v445_v30 = vadd.f32 %v1771_v34, %v444_v28 }
  0x9f   : > { %v413_v43 = vadd.f32 %v1771_v34, %v412_v41  ;;  %v422_v52 = vpop.f32.mrf.mxu1  ;;  %v430_v3 = vadd.f32 %v1771_v34, %v429_v62 }
  0xa0   : > { %v423_v58 = vadd.f32 %v1771_v34, %v422_v52  ;;  %v462_v32 = vmax.f32 %v445_v30, 0.0 }
  0xa1   : > { %v449_v46 = vmax.f32 %v413_v43, 0.0  ;;  %v456_v5 = vmax.f32 %v430_v3, 0.0 }
  0xa2   : > { %v453_v60 = vmax.f32 %v423_v58, 0.0  ;;  %v470_v33 = vpack.c.bf16 %v462_v32, %v461_v31 }
  0xa3   : > { %v467_v6 = vpack.c.bf16 %v456_v5, %v455_v4  ;;  %v1552_v4 = vld [vmem:[%s2034_s6 + $0x28] sm:$0xff]  ;;  %v1551_v5 = vld [vmem:[%s2034_s6 + $0x20] sm:$0xff] }
  0xa6   : > { %v414_v44 = vpop.f32.mrf.mxu0  ;;  %v432_v1 = vpop.f32.mrf.mxu2 }
  0xa7   : > { %v415_v45 = vadd.f32 %v1771_v34, %v414_v44  ;;  %v424_v57 = vpop.f32.mrf.mxu1  ;;  %v433_v10 = vadd.f32 %v1771_v34, %v432_v1  ;;  %v1554_v1 = vld [vmem:[%s2034_s6 + $0x38] sm:$0xff] }
  0xa8   : > { %v425_v59 = vadd.f32 %v1771_v34, %v424_v57  ;;  %797 = vmatpush.bf16.msrb.mxu3 %v1554_v1 }
  0xa9   : > { %v450_v47 = vmax.f32 %v415_v45, 0.0  ;;  %v457_v14 = vmax.f32 %v433_v10, 0.0 }
  0xaa   : > { %v454_v61 = vmax.f32 %v425_v59, 0.0 }
  0xab   : > { %v464_v48 = vpack.c.bf16 %v450_v47, %v449_v46 }
  0xac   : > { %v466_v63 = vpack.c.bf16 %v454_v61, %v453_v60  ;;  %798 = vmatpush.bf16.msrb.mxu3 %v1553_v2 }
  0xad   : > { %552 = vmatmul.bf16.gmra.mxu1 %v464_v48 }
  0xae   : > { %v434_v7 = vpop.f32.mrf.mxu2 }
  0xaf   : > { %v435_v11 = vadd.f32 %v1771_v34, %v434_v7 }
  0xb0   : > { %799 = vmatpush.bf16.msrb.mxu3 %v1552_v4  ;;  %v1562_v4 = vld [vmem:[%s2035_s7 + $0x38] sm:$0xff] }
  0xb1   : > { %v458_v15 = vmax.f32 %v435_v11, 0.0  ;;  %1242 = vmatpush.bf16.msrb.mxu0 %v1562_v4 }
  0xb3   : > { %v468_v16 = vpack.c.bf16 %v458_v15, %v457_v14  ;;  %v1547_v15 = vld [vmem:[%s2034_s6] sm:$0xff] }
  0xb4   : > { %800 = vmatpush.bf16.msrb.mxu3 %v1551_v5 }
  0xb6   : > { %v437_v13 = vpop.f32.mrf.mxu2 }
  0xb7   : > { %v438_v20 = vadd.f32 %v1771_v34, %v437_v13  ;;  %v1548_v13 = vld [vmem:[%s2034_s6 + $0x8] sm:$0xff] }
  0xb8   : > { %801 = vmatpush.bf16.msrb.mxu3 %v1550_v9 }
  0xb9   : > { %v459_v23 = vmax.f32 %v438_v20, 0.0 }
  0xbc   : > { %802 = vmatpush.bf16.msrb.mxu3 %v1549_v12  ;;  %v1559_v12 = vld [vmem:[%s2035_s7 + $0x20] sm:$0xff] }
  0xbd   : > { %557 = vmatmul.bf16.gmra.mxu1 %v465_v55 }
  0xbe   : > { %v439_v19 = vpop.f32.mrf.mxu2 }
  0xbf   : > { %v440_v21 = vadd.f32 %v1771_v34, %v439_v19 }
  0xc0   : > { %803 = vmatpush.bf16.msrb.mxu3 %v1548_v13  ;;  %v1558_v13 = vld [vmem:[%s2035_s7 + $0x18] sm:$0xff] }
  0xc1   : > { %v460_v24 = vmax.f32 %v440_v21, 0.0 }
  0xc3   : > { %v469_v25 = vpack.c.bf16 %v460_v24, %v459_v23 }
  0xc4   : > { %804 = vmatpush.bf16.msrb.mxu3 %v1547_v15 }
  0xcd   : > { %562 = vmatmul.bf16.gmra.mxu1 %v466_v63 }
  0xdd   : > { %567 = vmatmul.bf16.gmra.mxu1 %v467_v6 }
  0xed   : > { %572 = vmatmul.bf16.gmra.mxu1 %v468_v16 }
  0xfd   : > { %577 = vmatmul.bf16.gmra.mxu1 %v469_v25 }
 0x10d   : > { %582 = vmatmul.bf16.gmra.mxu1 %v470_v33 }
 0x11a   : > { %v548_v35 = vpop.f32.mrf.mxu1 }
 0x11b   : > { %v1816_v38 = vadd.f32 %v1575_v36, %v548_v35 }
 0x122   : > { %v550_v37 = vpop.f32.mrf.mxu1 }
 0x123   : > { %v1818_v39 = vadd.f32 %v1575_v36, %v550_v37 }
 0x125   : > { %v588_v40 = vpack.c.bf16 %v1818_v39, %v1816_v38 }
 0x127   : > { %668 = vmatmul.bf16.vlgmr.msrb.gmra.mxu2 %v588_v40 }
 0x12a   : > { %v553_v41 = vpop.f32.mrf.mxu1 }
 0x12b   : > { %v1822_v42 = vadd.f32 %v1575_v36, %v553_v41 }
 0x132   : > { %v555_v34 = vpop.f32.mrf.mxu1 }
 0x133   : > { %v1824_v43 = vadd.f32 %v1575_v36, %v555_v34 }
 0x135   : > { %v589_v44 = vpack.c.bf16 %v1824_v43, %v1822_v42 }
 0x137   : > { %673 = vmatmul.bf16.gmra.mxu2 %v589_v44 }
 0x13a   : > { %v558_v45 = vpop.f32.mrf.mxu1 }
 0x13b   : > { %v1828_v47 = vadd.f32 %v1575_v36, %v558_v45 }
 0x142   : > { %v560_v46 = vpop.f32.mrf.mxu1 }
 0x143   : > { %v1830_v48 = vadd.f32 %v1575_v36, %v560_v46 }
 0x145   : > { %v590_v49 = vpack.c.bf16 %v1830_v48, %v1828_v47 }
 0x147   : > { %678 = vmatmul.bf16.gmra.mxu2 %v590_v49 }
 0x14a   : > { %v563_v50 = vpop.f32.mrf.mxu1 }
 0x14b   : > { %v1834_v52 = vadd.f32 %v1575_v36, %v563_v50 }
 0x152   : > { %v565_v51 = vpop.f32.mrf.mxu1 }
 0x153   : > { %v1836_v53 = vadd.f32 %v1575_v36, %v565_v51 }
 0x155   : > { %v591_v54 = vpack.c.bf16 %v1836_v53, %v1834_v52 }
 0x157   : > { %683 = vmatmul.bf16.gmra.mxu2 %v591_v54 }
 0x15a   : > { %v568_v55 = vpop.f32.mrf.mxu1 }
 0x15b   : > { %v1840_v57 = vadd.f32 %v1575_v36, %v568_v55 }
 0x162   : > { %v570_v56 = vpop.f32.mrf.mxu1 }
 0x163   : > { %v1842_v58 = vadd.f32 %v1575_v36, %v570_v56 }
 0x165   : > { %v592_v59 = vpack.c.bf16 %v1842_v58, %v1840_v57 }
 0x167   : > { %688 = vmatmul.bf16.gmra.mxu2 %v592_v59 }
 0x16a   : > { %v573_v60 = vpop.f32.mrf.mxu1 }
 0x16b   : > { %v1846_v62 = vadd.f32 %v1575_v36, %v573_v60 }
 0x172   : > { %v575_v61 = vpop.f32.mrf.mxu1 }
 0x173   : > { %v1848_v63 = vadd.f32 %v1575_v36, %v575_v61 }
 0x175   : > { %v593_v0 = vpack.c.bf16 %v1848_v63, %v1846_v62 }
 0x177   : > { %693 = vmatmul.bf16.gmra.mxu2 %v593_v0 }
 0x17a   : > { %v578_v3 = vpop.f32.mrf.mxu1 }
 0x17b   : > { %v1864_v7 = vadd.f32 %v1575_v36, %v578_v3 }
 0x182   : > { %v580_v6 = vpop.f32.mrf.mxu1 }
 0x183   : > { %v1866_v8 = vadd.f32 %v1575_v36, %v580_v6 }
 0x185   : > { %v594_v10 = vpack.c.bf16 %v1866_v8, %v1864_v7 }
 0x187   : > { %698 = vmatmul.bf16.gmra.mxu2 %v594_v10  ;;  %v1561_v10 = vld [vmem:[%s2035_s7 + $0x30] sm:$0xff] }
 0x188   : > { %1243 = vmatpush.bf16.msrb.mxu0 %v1561_v10 }
 0x18a   : > { %v583_v11 = vpop.f32.mrf.mxu1 }
 0x18b   : > { %v1882_v16 = vadd.f32 %v1575_v36, %v583_v11  ;;  %v1560_v11 = vld [vmem:[%s2035_s7 + $0x28] sm:$0xff] }
 0x18c   : > { %1244 = vmatpush.bf16.msrb.mxu0 %v1560_v11 }
 0x190   : > { %1245 = vmatpush.bf16.msrb.mxu0 %v1559_v12 }
 0x192   : > { %v585_v14 = vpop.f32.mrf.mxu1 }
 0x193   : > { %v1884_v17 = vadd.f32 %v1575_v36, %v585_v14  ;;  %v1557_v14 = vld [vmem:[%s2035_s7 + $0x10] sm:$0xff] }
 0x194   : > { %1246 = vmatpush.bf16.msrb.mxu0 %v1558_v13 }
 0x195   : > { %v595_v18 = vpack.c.bf16 %v1884_v17, %v1882_v16 }
 0x197   : > { %703 = vmatmul.bf16.gmra.mxu2 %v595_v18  ;;  %v1556_v18 = vld [vmem:[%s2035_s7 + $0x8] sm:$0xff] }
 0x198   : > { %1247 = vmatpush.bf16.msrb.mxu0 %v1557_v14 }
 0x19c   : > { %1248 = vmatpush.bf16.msrb.mxu0 %v1556_v18 }
 0x1aa   : > { %v669_v19 = vpop.f32.mrf.mxu2 }
 0x1ab   : > { %v709_v21 = vmax.f32 %v669_v19, 0.0 }
 0x1b2   : > { %v671_v20 = vpop.f32.mrf.mxu2 }
 0x1b3   : > { %v710_v22 = vmax.f32 %v671_v20, 0.0  ;;  %v1555_v20 = vld [vmem:[%s2035_s7] sm:$0xff] }
 0x1b4   : > { %1249 = vmatpush.bf16.msrb.mxu0 %v1555_v20 }
 0x1b5   : > { %v725_v23 = vpack.c.bf16 %v710_v22, %v709_v21 }
 0x1b7   : > { %805 = vmatmul.bf16.vlgmr.msrb.gmra.mxu3 %v725_v23 }
 0x1ba   : > { %v674_v24 = vpop.f32.mrf.mxu2 }
 0x1bb   : > { %v711_v26 = vmax.f32 %v674_v24, 0.0 }
 0x1c2   : > { %v676_v25 = vpop.f32.mrf.mxu2 }
 0x1c3   : > { %v712_v27 = vmax.f32 %v676_v25, 0.0 }
 0x1c5   : > { %v726_v28 = vpack.c.bf16 %v712_v27, %v711_v26 }
 0x1c7   : > { %810 = vmatmul.bf16.gmra.mxu3 %v726_v28 }
 0x1ca   : > { %v679_v29 = vpop.f32.mrf.mxu2 }
 0x1cb   : > { %v713_v31 = vmax.f32 %v679_v29, 0.0 }
 0x1d2   : > { %v681_v30 = vpop.f32.mrf.mxu2 }
 0x1d3   : > { %v714_v32 = vmax.f32 %v681_v30, 0.0 }
 0x1d5   : > { %v727_v33 = vpack.c.bf16 %v714_v32, %v713_v31 }
 0x1d7   : > { %815 = vmatmul.bf16.gmra.mxu3 %v727_v33 }
 0x1da   : > { %v684_v35 = vpop.f32.mrf.mxu2 }
 0x1db   : > { %v715_v37 = vmax.f32 %v684_v35, 0.0 }
 0x1e2   : > { %v686_v36 = vpop.f32.mrf.mxu2 }
 0x1e3   : > { %v716_v40 = vmax.f32 %v686_v36, 0.0 }
 0x1e5   : > { %v728_v41 = vpack.c.bf16 %v716_v40, %v715_v37 }
 0x1e7   : > { %820 = vmatmul.bf16.gmra.mxu3 %v728_v41 }
 0x1ea   : > { %v689_v34 = vpop.f32.mrf.mxu2 }
 0x1eb   : > { %v717_v45 = vmax.f32 %v689_v34, 0.0 }
 0x1f2   : > { %v691_v44 = vpop.f32.mrf.mxu2 }
 0x1f3   : > { %v718_v46 = vmax.f32 %v691_v44, 0.0 }
 0x1f5   : > { %v729_v49 = vpack.c.bf16 %v718_v46, %v717_v45 }
 0x1f7   : > { %825 = vmatmul.bf16.gmra.mxu3 %v729_v49 }
 0x1fa   : > { %v694_v50 = vpop.f32.mrf.mxu2 }
 0x1fb   : > { %v719_v54 = vmax.f32 %v694_v50, 0.0 }
 0x202   : > { %v696_v51 = vpop.f32.mrf.mxu2 }
 0x203   : > { %v720_v55 = vmax.f32 %v696_v51, 0.0 }
 0x205   : > { %v730_v56 = vpack.c.bf16 %v720_v55, %v719_v54 }
 0x207   : > { %830 = vmatmul.bf16.gmra.mxu3 %v730_v56 }
 0x20a   : > { %v699_v59 = vpop.f32.mrf.mxu2 }
 0x20b   : > { %v721_v61 = vmax.f32 %v699_v59, 0.0 }
 0x212   : > { %v701_v60 = vpop.f32.mrf.mxu2 }
 0x213   : > { %v722_v0 = vmax.f32 %v701_v60, 0.0 }
 0x215   : > { %v731_v1 = vpack.c.bf16 %v722_v0, %v721_v61 }
 0x217   : > { %835 = vmatmul.bf16.gmra.mxu3 %v731_v1 }
 0x21a   : > { %v704_v2 = vpop.f32.mrf.mxu2 }
 0x21b   : > { %v723_v5 = vmax.f32 %v704_v2, 0.0 }
 0x222   : > { %v706_v3 = vpop.f32.mrf.mxu2 }
 0x223   : > { %v724_v6 = vmax.f32 %v706_v3, 0.0 }
 0x225   : > { %v732_v9 = vpack.c.bf16 %v724_v6, %v723_v5 }
 0x227   : > { %840 = vmatmul.bf16.gmra.mxu3 %v732_v9 }
 0x23a   : > { %v806_v15 = vpop.f32.mrf.mxu3 }
 0x23b   : > { %v1480_v19 = vmul.f32 -1.442695, %v806_v15 }
 0x23d   : > { %1577 = vpow2.f32 %v1480_v19 }
 0x242   : > { %v808_v21 = vpop.f32.mrf.mxu3 }
 0x243   : > { %v1578_v22 = vpop.eup %1577  ;;  %v1481_v23 = vmul.f32 -1.442695, %v808_v21 }
 0x244   : > { %v894_v24 = vadd.f32 1.0, %v1578_v22 }
 0x245   : > { %1579 = vpow2.f32 %v1481_v23 }
 0x246   : > { %1581 = vrcp.f32 %v894_v24  ;;  %v921_v44 = vand.u32 2147483648, %v894_v24  ;;  %vm915_vm2 = vweird.f32 %v894_v24  ;;  %v919_v46 = vand.u32 2147483647, %v894_v24 }
 0x248   : > { %v922_v59 = vor.u32 1.1754944e-38, %v921_v44  ;;  %vm920_vm5 = vcmp.eq.f32.partialorder %v919_v46, 8.507059e+37 }
 0x24a   : > { %v811_v25 = vpop.f32.mrf.mxu3 }
 0x24b   : > { %v1580_v26 = vpop.eup %1579  ;;  %v1482_v27 = vmul.f32 -1.442695, %v811_v25 }
 0x24c   : > { %v1582_v28 = vpop.eup %1581  ;;  %v895_v29 = vadd.f32 1.0, %v1580_v26 }
 0x24d   : > { %v911_v30 = vmul.f32 %v1582_v28, %v894_v24  ;;  %1583 = vpow2.f32 %v1482_v27  ;;  %vm916_vm1 = vweird.f32 %v1582_v28 }
 0x24e   : > { %1585 = vrcp.f32 %v895_v29  ;;  %vm1915_vm3 = vmor %vm915_vm2, %vm916_vm1  ;;  %v936_v50 = vand.u32 2147483648, %v895_v29  ;;  %v934_v55 = vand.u32 2147483647, %v895_v29  ;;  %vm930_vm6 = vweird.f32 %v895_v29 }
 0x24f   : > { %v912_v31 = vsub.f32 1.0, %v911_v30 }
 0x250   : > { %v937_v4 = vor.u32 1.1754944e-38, %v936_v50  ;;  %vm935_vm8 = vcmp.eq.f32.partialorder %v934_v55, 8.507059e+37 }
 0x251   : > { %v913_v32 = vmul.f32 %v1582_v28, %v912_v31 }
 0x252   : > { %v813_v33 = vpop.f32.mrf.mxu3 }
 0x253   : > { %v1584_v35 = vpop.eup %1583  ;;  %v1483_v36 = vmul.f32 -1.442695, %v813_v33  ;;  %v914_v34 = vadd.f32 %v1582_v28, %v913_v32 }
 0x254   : > { %v1586_v37 = vpop.eup %1585  ;;  %v1912_v40 = vadd.f32 1.0, %v1584_v35 }
 0x255   : > { %v926_v41 = vmul.f32 %v1586_v37, %v895_v29  ;;  %1587 = vpow2.f32 %v1483_v36  ;;  %v918_v51 = vsel %vm1915_vm3, %v1582_v28, %v914_v34  ;;  %vm931_vm4 = vweird.f32 %v1586_v37 }
 0x256   : > { %1589 = vrcp.f32 %v1912_v40  ;;  %v923_v3 = vsel %vm920_vm5, %v922_v59, %v918_v51  ;;  %vm932_vm7 = vmor %vm930_vm6, %vm931_vm4  ;;  %vm945_vm10 = vweird.f32 %v1912_v40 }
 0x257   : > { %v927_v45 = vsub.f32 1.0, %v926_v41  ;;  %v1150_v10 = vmul.f32 %v923_v3, %v1816_v38  ;;  %v951_v38 = vand.u32 2147483648, %v1912_v40 }
 0x259   : > { %v928_v54 = vmul.f32 %v1586_v37, %v927_v45  ;;  %v952_v31 = vor.u32 1.1754944e-38, %v951_v38 }
 0x25a   : > { %v816_v56 = vpop.f32.mrf.mxu3 }
 0x25b   : > { %v1588_v60 = vpop.eup %1587  ;;  %v1484_v61 = vmul.f32 -1.442695, %v816_v56  ;;  %v929_v0 = vadd.f32 %v1586_v37, %v928_v54 }
 0x25c   : > { %v1590_v1 = vpop.eup %1589  ;;  %v897_v2 = vadd.f32 1.0, %v1588_v60 }
 0x25d   : > { %v941_v5 = vmul.f32 %v1590_v1, %v1912_v40  ;;  %1591 = vpow2.f32 %v1484_v61  ;;  %v933_v6 = vsel %vm932_vm7, %v1586_v37, %v929_v0  ;;  %vm946_vm9 = vweird.f32 %v1590_v1 }
 0x25e   : > { %1593 = vrcp.f32 %v897_v2  ;;  %v938_v9 = vsel %vm935_vm8, %v937_v4, %v933_v6  ;;  %vm1930_vm11 = vmor %vm945_vm10, %vm946_vm9  ;;  %v966_v26 = vand.u32 2147483648, %v897_v2  ;;  %v964_v29 = vand.u32 2147483647, %v897_v2 }
 0x25f   : > { %v1151_v11 = vmul.f32 %v938_v9, %v1818_v39  ;;  %v942_v12 = vsub.f32 1.0, %v941_v5  ;;  %v949_v39 = vand.u32 2147483647, %v1912_v40  ;;  %vm960_vm14 = vweird.f32 %v897_v2 }
 0x260   : > { %v967_v41 = vor.u32 1.1754944e-38, %v966_v26  ;;  %vm965_vm0 = vcmp.eq.f32.partialorder %v964_v29, 8.507059e+37 }
 0x261   : > { %v1166_v13 = vpack.c.bf16 %v1151_v11, %v1150_v10  ;;  %v943_v14 = vmul.f32 %v1590_v1, %v942_v12  ;;  %vm950_vm13 = vcmp.eq.f32.partialorder %v949_v39, 8.507059e+37 }
 0x262   : > { %v818_v15 = vpop.f32.mrf.mxu3 }
 0x263   : > { %v1592_v18 = vpop.eup %1591  ;;  %v1485_v19 = vmul.f32 -1.442695, %v818_v15  ;;  %1250 = vmatmul.bf16.vlgmr.msrb.gmra.mxu0 %v1166_v13  ;;  %v944_v23 = vadd.f32 %v1590_v1, %v943_v14 }
 0x264   : > { %v1594_v20 = vpop.eup %1593  ;;  %v1924_v21 = vadd.f32 1.0, %v1592_v18 }
 0x265   : > { %v956_v22 = vmul.f32 %v1594_v20, %v897_v2  ;;  %1595 = vpow2.f32 %v1485_v19  ;;  %v948_v27 = vsel %vm1930_vm11, %v1590_v1, %v944_v23  ;;  %vm961_vm12 = vweird.f32 %v1594_v20 }
 0x266   : > { %1597 = vrcp.f32 %v1924_v21  ;;  %v953_v40 = vsel %vm950_vm13, %v952_v31, %v948_v27  ;;  %vm962_vm15 = vmor %vm960_vm14, %vm961_vm12  ;;  %vm975_vm2 = vweird.f32 %v1924_v21 }
 0x267   : > { %v957_v24 = vsub.f32 1.0, %v956_v22  ;;  %v1152_v46 = vmul.f32 %v953_v40, %v1822_v42  ;;  %v981_v42 = vand.u32 2147483648, %v1924_v21 }
 0x269   : > { %v958_v28 = vmul.f32 %v1594_v20, %v957_v24  ;;  %v982_v11 = vor.u32 1.1754944e-38, %v981_v42 }
 0x26a   : > { %v821_v30 = vpop.f32.mrf.mxu3 }
 0x26b   : > { %v1596_v32 = vpop.eup %1595  ;;  %v1486_v33 = vmul.f32 -1.442695, %v821_v30  ;;  %v959_v35 = vadd.f32 %v1594_v20, %v958_v28 }
 0x26c   : > { %v1598_v36 = vpop.eup %1597  ;;  %v899_v37 = vadd.f32 1.0, %v1596_v32 }
 0x26d   : > { %v971_v34 = vmul.f32 %v1598_v36, %v1924_v21  ;;  %1599 = vpow2.f32 %v1486_v33  ;;  %v963_v44 = vsel %vm962_vm15, %v1594_v20, %v959_v35  ;;  %vm976_vm1 = vweird.f32 %v1598_v36 }
 0x26e   : > { %1601 = vrcp.f32 %v899_v37  ;;  %v968_v45 = vsel %vm965_vm0, %v967_v41, %v963_v44  ;;  %vm1945_vm3 = vmor %vm975_vm2, %vm976_vm1  ;;  %v996_v4 = vand.u32 2147483648, %v899_v37  ;;  %v994_v9 = vand.u32 2147483647, %v899_v37 }
 0x26f   : > { %v1153_v49 = vmul.f32 %v968_v45, %v1824_v43  ;;  %v972_v50 = vsub.f32 1.0, %v971_v34  ;;  %v979_v43 = vand.u32 2147483647, %v1924_v21  ;;  %vm990_vm6 = vweird.f32 %v899_v37 }
 0x270   : > { %v997_v20 = vor.u32 1.1754944e-38, %v996_v4  ;;  %vm995_vm8 = vcmp.eq.f32.partialorder %v994_v9, 8.507059e+37 }
 0x271   : > { %v1167_v51 = vpack.c.bf16 %v1153_v49, %v1152_v46  ;;  %v973_v54 = vmul.f32 %v1598_v36, %v972_v50  ;;  %vm980_vm5 = vcmp.eq.f32.partialorder %v979_v43, 8.507059e+37 }
 0x272   : > { %v823_v55 = vpop.f32.mrf.mxu3 }
 0x273   : > { %v1600_v56 = vpop.eup %1599  ;;  %v1487_v59 = vmul.f32 -1.442695, %v823_v55  ;;  %1255 = vmatmul.bf16.gmra.mxu0 %v1167_v51  ;;  %v974_v1 = vadd.f32 %v1598_v36, %v973_v54 }
 0x274   : > { %v1602_v60 = vpop.eup %1601  ;;  %v1939_v61 = vadd.f32 1.0, %v1600_v56 }
 0x275   : > { %v986_v0 = vmul.f32 %v1602_v60, %v899_v37  ;;  %1603 = vpow2.f32 %v1487_v59  ;;  %v978_v5 = vsel %vm1945_vm3, %v1598_v36, %v974_v1  ;;  %vm991_vm4 = vweird.f32 %v1602_v60 }
 0x276   : > { %1605 = vrcp.f32 %v1939_v61  ;;  %v983_v19 = vsel %vm980_vm5, %v982_v11, %v978_v5  ;;  %vm992_vm7 = vmor %vm990_vm6, %vm991_vm4  ;;  %vm1005_vm10 = vweird.f32 %v1939_v61 }
 0x277   : > { %v987_v2 = vsub.f32 1.0, %v986_v0  ;;  %v1154_v38 = vmul.f32 %v983_v19, %v1828_v47  ;;  %v1011_v47 = vand.u32 2147483648, %v1939_v61 }
 0x279   : > { %v988_v6 = vmul.f32 %v1602_v60, %v987_v2  ;;  %v1012_v45 = vor.u32 1.1754944e-38, %v1011_v47 }
 0x27a   : > { %v826_v10 = vpop.f32.mrf.mxu3 }
 0x27b   : > { %v1604_v12 = vpop.eup %1603  ;;  %v1488_v13 = vmul.f32 -1.442695, %v826_v10  ;;  %v989_v14 = vadd.f32 %v1602_v60, %v988_v6 }
 0x27c   : > { %v1606_v15 = vpop.eup %1605  ;;  %v901_v18 = vadd.f32 1.0, %v1604_v12 }
 0x27d   : > { %v1001_v21 = vmul.f32 %v1606_v15, %v1939_v61  ;;  %1607 = vpow2.f32 %v1488_v13  ;;  %v993_v22 = vsel %vm992_vm7, %v1602_v60, %v989_v14  ;;  %vm1006_vm9 = vweird.f32 %v1606_v15 }
 0x27e   : > { %1609 = vrcp.f32 %v901_v18  ;;  %v998_v23 = vsel %vm995_vm8, %v997_v20, %v993_v22  ;;  %vm1960_vm11 = vmor %vm1005_vm10, %vm1006_vm9  ;;  %v1026_v37 = vand.u32 2147483648, %v901_v18  ;;  %v1024_v34 = vand.u32 2147483647, %v901_v18 }
 0x27f   : > { %v1155_v39 = vmul.f32 %v998_v23, %v1830_v48  ;;  %v1002_v24 = vsub.f32 1.0, %v1001_v21  ;;  %v1009_v48 = vand.u32 2147483647, %v1939_v61  ;;  %vm1020_vm14 = vweird.f32 %v901_v18 }
 0x280   : > { %v1027_v56 = vor.u32 1.1754944e-38, %v1026_v37  ;;  %vm1025_vm0 = vcmp.eq.f32.partialorder %v1024_v34, 8.507059e+37 }
 0x281   : > { %v1168_v25 = vpack.c.bf16 %v1155_v39, %v1154_v38  ;;  %v1003_v26 = vmul.f32 %v1606_v15, %v1002_v24  ;;  %vm1010_vm13 = vcmp.eq.f32.partialorder %v1009_v48, 8.507059e+37 }
 0x282   : > { %v828_v27 = vpop.f32.mrf.mxu3 }
 0x283   : > { %v1608_v28 = vpop.eup %1607  ;;  %v1489_v29 = vmul.f32 -1.442695, %v828_v27  ;;  %1260 = vmatmul.bf16.gmra.mxu0 %v1168_v25  ;;  %v1004_v33 = vadd.f32 %v1606_v15, %v1003_v26 }
 0x284   : > { %v1610_v30 = vpop.eup %1609  ;;  %v1954_v31 = vadd.f32 1.0, %v1608_v28 }
 0x285   : > { %v1016_v32 = vmul.f32 %v1610_v30, %v901_v18  ;;  %1611 = vpow2.f32 %v1489_v29  ;;  %v1008_v40 = vsel %vm1960_vm11, %v1606_v15, %v1004_v33  ;;  %vm1021_vm12 = vweird.f32 %v1610_v30 }
 0x286   : > { %1613 = vrcp.f32 %v1954_v31  ;;  %v1013_v55 = vsel %vm1010_vm13, %v1012_v45, %v1008_v40  ;;  %vm1022_vm15 = vmor %vm1020_vm14, %vm1021_vm12  ;;  %vm1035_vm2 = vweird.f32 %v1954_v31 }
 0x287   : > { %v1017_v35 = vsub.f32 1.0, %v1016_v32  ;;  %v1156_v0 = vmul.f32 %v1013_v55, %v1834_v52  ;;  %v1041_v52 = vand.u32 2147483648, %v1954_v31 }
 0x289   : > { %v1018_v41 = vmul.f32 %v1610_v30, %v1017_v35  ;;  %v1042_v21 = vor.u32 1.1754944e-38, %v1041_v52 }
 0x28a   : > { %v831_v44 = vpop.f32.mrf.mxu3 }
 0x28b   : > { %v1612_v46 = vpop.eup %1611  ;;  %v1490_v49 = vmul.f32 -1.442695, %v831_v44  ;;  %v1019_v50 = vadd.f32 %v1610_v30, %v1018_v41 }
 0x28c   : > { %v1614_v51 = vpop.eup %1613  ;;  %v903_v54 = vadd.f32 1.0, %v1612_v46 }
 0x28d   : > { %v1031_v59 = vmul.f32 %v1614_v51, %v1954_v31  ;;  %1615 = vpow2.f32 %v1490_v49  ;;  %v1023_v60 = vsel %vm1022_vm15, %v1610_v30, %v1019_v50  ;;  %vm1036_vm1 = vweird.f32 %v1614_v51 }
 0x28e   : > { %1617 = vrcp.f32 %v903_v54  ;;  %v1028_v61 = vsel %vm1025_vm0, %v1027_v56, %v1023_v60  ;;  %vm1975_vm3 = vmor %vm1035_vm2, %vm1036_vm1  ;;  %v1056_v14 = vand.u32 2147483648, %v903_v54  ;;  %v1054_v19 = vand.u32 2147483647, %v903_v54 }
 0x28f   : > { %v1157_v1 = vmul.f32 %v1028_v61, %v1836_v53  ;;  %v1032_v42 = vsub.f32 1.0, %v1031_v59  ;;  %v1039_v53 = vand.u32 2147483647, %v1954_v31  ;;  %vm1050_vm6 = vweird.f32 %v903_v54 }
 0x290   : > { %v1057_v26 = vor.u32 1.1754944e-38, %v1056_v14  ;;  %vm1055_vm8 = vcmp.eq.f32.partialorder %v1054_v19, 8.507059e+37 }
 0x291   : > { %v1169_v43 = vpack.c.bf16 %v1157_v1, %v1156_v0  ;;  %v1033_v2 = vmul.f32 %v1614_v51, %v1032_v42  ;;  %vm1040_vm5 = vcmp.eq.f32.partialorder %v1039_v53, 8.507059e+37 }
 0x292   : > { %v833_v3 = vpop.f32.mrf.mxu3 }
 0x293   : > { %v1616_v4 = vpop.eup %1615  ;;  %v1491_v5 = vmul.f32 -1.442695, %v833_v3  ;;  %1265 = vmatmul.bf16.gmra.mxu0 %v1169_v43  ;;  %v1034_v11 = vadd.f32 %v1614_v51, %v1033_v2 }
 0x294   : > { %v1618_v6 = vpop.eup %1617  ;;  %v1969_v9 = vadd.f32 1.0, %v1616_v4 }
 0x295   : > { %v1046_v10 = vmul.f32 %v1618_v6, %v903_v54  ;;  %1619 = vpow2.f32 %v1491_v5  ;;  %v1038_v15 = vsel %vm1975_vm3, %v1614_v51, %v1034_v11  ;;  %vm1051_vm4 = vweird.f32 %v1618_v6 }
 0x296   : > { %1621 = vrcp.f32 %v1969_v9  ;;  %v1043_v25 = vsel %vm1040_vm5, %v1042_v21, %v1038_v15  ;;  %vm1052_vm7 = vmor %vm1050_vm6, %vm1051_vm4  ;;  %v1071_v44 = vand.u32 2147483648, %v1969_v9  ;;  %vm1065_vm10 = vweird.f32 %v1969_v9 }
 0x297   : > { %v1047_v12 = vsub.f32 1.0, %v1046_v10  ;;  %v1158_v30 = vmul.f32 %v1043_v25, %v1840_v57  ;;  %v1069_v57 = vand.u32 2147483647, %v1969_v9 }
 0x298   : > { %v1072_v55 = vor.u32 1.1754944e-38, %v1071_v44 }
 0x299   : > { %v1048_v18 = vmul.f32 %v1618_v6, %v1047_v12  ;;  %vm1070_vm13 = vcmp.eq.f32.partialorder %v1069_v57, 8.507059e+37 }
 0x29a   : > { %v836_v20 = vpop.f32.mrf.mxu3 }
 0x29b   : > { %v1620_v22 = vpop.eup %1619  ;;  %v1492_v23 = vmul.f32 -1.442695, %v836_v20  ;;  %v1049_v38 = vadd.f32 %v1618_v6, %v1048_v18 }
 0x29c   : > { %v1622_v39 = vpop.eup %1621  ;;  %v905_v24 = vadd.f32 1.0, %v1620_v22 }
 0x29d   : > { %v1061_v27 = vmul.f32 %v1622_v39, %v1969_v9  ;;  %1623 = vpow2.f32 %v1492_v23  ;;  %v1053_v28 = vsel %vm1052_vm7, %v1618_v6, %v1049_v38  ;;  %vm1066_vm9 = vweird.f32 %v1622_v39 }
 0x29e   : > { %1625 = vrcp.f32 %v905_v24  ;;  %v1058_v29 = vsel %vm1055_vm8, %v1057_v26, %v1053_v28  ;;  %vm1987_vm11 = vmor %vm1065_vm10, %vm1066_vm9  ;;  %v1086_v46 = vand.u32 2147483648, %v905_v24  ;;  %v1084_v51 = vand.u32 2147483647, %v905_v24 }
 0x29f   : > { %v1159_v31 = vmul.f32 %v1058_v29, %v1842_v58  ;;  %v1062_v32 = vsub.f32 1.0, %v1061_v27  ;;  %vm1080_vm14 = vweird.f32 %v905_v24 }
 0x2a0   : > { %v1087_v42 = vor.u32 1.1754944e-38, %v1086_v46  ;;  %vm1085_vm0 = vcmp.eq.f32.partialorder %v1084_v51, 8.507059e+37 }
 0x2a1   : > { %v1170_v33 = vpack.c.bf16 %v1159_v31, %v1158_v30  ;;  %v1063_v47 = vmul.f32 %v1622_v39, %v1062_v32 }
 0x2a2   : > { %v838_v48 = vpop.f32.mrf.mxu3 }
 0x2a3   : > { %v1624_v35 = vpop.eup %1623  ;;  %v1493_v36 = vmul.f32 -1.442695, %v838_v48  ;;  %1270 = vmatmul.bf16.gmra.mxu0 %v1170_v33  ;;  %v1064_v34 = vadd.f32 %v1622_v39, %v1063_v47 }
 0x2a4   : > { %v1626_v37 = vpop.eup %1625  ;;  %v906_v40 = vadd.f32 1.0, %v1624_v35 }
 0x2a5   : > { %v1076_v41 = vmul.f32 %v1626_v37, %v905_v24  ;;  %1627 = vpow2.f32 %v1493_v36  ;;  %v1068_v49 = vsel %vm1987_vm11, %v1622_v39, %v1064_v34  ;;  %vm1081_vm12 = vweird.f32 %v1626_v37 }
 0x2a6   : > { %1629 = vrcp.f32 %v906_v40  ;;  %v1073_v1 = vsel %vm1070_vm13, %v1072_v55, %v1068_v49  ;;  %vm1082_vm15 = vmor %vm1080_vm14, %vm1081_vm12  ;;  %v1101_v18 = vand.u32 2147483648, %v906_v40  ;;  %vm1095_vm2 = vweird.f32 %v906_v40 }
 0x2a7   : > { %v1077_v58 = vsub.f32 1.0, %v1076_v41  ;;  %v1160_v4 = vmul.f32 %v1073_v1, %v1846_v62  ;;  %v1099_v19 = vand.u32 2147483647, %v906_v40 }
 0x2a8   : > { %v1102_v23 = vor.u32 1.1754944e-38, %v1101_v18 }
 0x2a9   : > { %v1078_v50 = vmul.f32 %v1626_v37, %v1077_v58  ;;  %vm1100_vm5 = vcmp.eq.f32.partialorder %v1099_v19, 8.507059e+37 }
 0x2aa   : > { %v841_v54 = vpop.f32.mrf.mxu3 }
 0x2ab   : > { %v1628_v56 = vpop.eup %1627  ;;  %v1494_v59 = vmul.f32 -1.442695, %v841_v54  ;;  %v1079_v60 = vadd.f32 %v1626_v37, %v1078_v50 }
 0x2ac   : > { %v1630_v61 = vpop.eup %1629  ;;  %v907_v0 = vadd.f32 1.0, %v1628_v56 }
 0x2ad   : > { %v1091_v43 = vmul.f32 %v1630_v61, %v906_v40  ;;  %1631 = vpow2.f32 %v1494_v59  ;;  %v1083_v2 = vsel %vm1082_vm15, %v1626_v37, %v1079_v60  ;;  %vm1096_vm1 = vweird.f32 %v1630_v61  ;;  %v1576_v59 = vld [vmem:[%s2036_s8] ss:$0 sm:$0xff] }
 0x2ae   : > { %1633 = vrcp.f32 %v907_v0  ;;  %v1088_v3 = vsel %vm1085_vm0, %v1087_v42, %v1083_v2  ;;  %vm1097_vm3 = vmor %vm1095_vm2, %vm1096_vm1  ;;  %v1114_v22 = vand.u32 2147483647, %v907_v0  ;;  %vm1110_vm6 = vweird.f32 %v907_v0 }
 0x2af   : > { %v1161_v5 = vmul.f32 %v1088_v3, %v1848_v63  ;;  %v1092_v6 = vsub.f32 1.0, %v1091_v43  ;;  %v1116_v63 = vand.u32 2147483648, %v907_v0 }
 0x2b0   : > { %vm1115_vm8 = vcmp.eq.f32.partialorder %v1114_v22, 8.507059e+37 }
 0x2b1   : > { %v1171_v9 = vpack.c.bf16 %v1161_v5, %v1160_v4  ;;  %v1093_v10 = vmul.f32 %v1630_v61, %v1092_v6  ;;  %v1117_v27 = vor.u32 1.1754944e-38, %v1116_v63 }
 0x2b2   : > { %v843_v11 = vpop.f32.mrf.mxu3 }
 0x2b3   : > { %v1632_v52 = vpop.eup %1631  ;;  %v1495_v53 = vmul.f32 -1.442695, %v843_v11  ;;  %1275 = vmatmul.bf16.gmra.mxu0 %v1171_v9  ;;  %v1094_v15 = vadd.f32 %v1630_v61, %v1093_v10 }
 0x2b4   : > { %v1634_v12 = vpop.eup %1633  ;;  %v908_v13 = vadd.f32 1.0, %v1632_v52 }
 0x2b5   : > { %v1106_v14 = vmul.f32 %v1634_v12, %v907_v0  ;;  %1635 = vpow2.f32 %v1495_v53  ;;  %v1098_v20 = vsel %vm1097_vm3, %v1630_v61, %v1094_v15  ;;  %vm1111_vm4 = vweird.f32 %v1634_v12 }
 0x2b6   : > { %1637 = vrcp.f32 %v908_v13  ;;  %v1103_v26 = vsel %vm1100_vm5, %v1102_v23, %v1098_v20  ;;  %vm1112_vm7 = vmor %vm1110_vm6, %vm1111_vm4  ;;  %v1131_v40 = vand.u32 2147483648, %v908_v13  ;;  %vm1125_vm10 = vweird.f32 %v908_v13 }
 0x2b7   : > { %v1107_v62 = vsub.f32 1.0, %v1106_v14  ;;  %v1162_v31 = vmul.f32 %v1103_v26, %v1864_v7  ;;  %v1129_v34 = vand.u32 2147483647, %v908_v13 }
 0x2b9   : > { %v1108_v21 = vmul.f32 %v1634_v12, %v1107_v62  ;;  %vm1130_vm13 = vcmp.eq.f32.partialorder %v1129_v34, 8.507059e+37 }
 0x2bb   : > { %v1636_v38 = vpop.eup %1635  ;;  %v1109_v39 = vadd.f32 %v1634_v12, %v1108_v21 }
 0x2bc   : > { %v1638_v24 = vpop.eup %1637  ;;  %v909_v25 = vadd.f32 1.0, %v1636_v38 }
 0x2bd   : > { %v1121_v28 = vmul.f32 %v1638_v24, %v908_v13  ;;  %v1113_v29 = vsel %vm1112_vm7, %v1634_v12, %v1109_v39  ;;  %vm1126_vm9 = vweird.f32 %v1638_v24 }
 0x2be   : > { %1639 = vrcp.f32 %v909_v25  ;;  %v1118_v30 = vsel %vm1115_vm8, %v1117_v27, %v1113_v29  ;;  %vm1127_vm11 = vmor %vm1125_vm10, %vm1126_vm9  ;;  %v1146_v44 = vand.u32 2147483648, %v909_v25  ;;  %v1144_v7 = vand.u32 2147483647, %v909_v25 }
 0x2bf   : > { %v1163_v32 = vmul.f32 %v1118_v30, %v1866_v8  ;;  %v1122_v33 = vsub.f32 1.0, %v1121_v28  ;;  %v1132_v8 = vor.u32 1.1754944e-38, %v1131_v40  ;;  %vm1140_vm14 = vweird.f32 %v909_v25 }
 0x2c0   : > { %v1147_v49 = vor.u32 1.1754944e-38, %v1146_v44  ;;  %vm1145_vm0 = vcmp.eq.f32.partialorder %v1144_v7, 8.507059e+37 }
 0x2c1   : > { %v1172_v47 = vpack.c.bf16 %v1163_v32, %v1162_v31  ;;  %v1123_v48 = vmul.f32 %v1638_v24, %v1122_v33 }
 0x2c3   : > { %1280 = vmatmul.bf16.gmra.mxu0 %v1172_v47  ;;  %v1124_v37 = vadd.f32 %v1638_v24, %v1123_v48 }
 0x2c4   : > { %v1640_v35 = vpop.eup %1639 }
 0x2c5   : > { %v1136_v36 = vmul.f32 %v1640_v35, %v909_v25  ;;  %v1128_v57 = vsel %vm1127_vm11, %v1638_v24, %v1124_v37  ;;  %vm1141_vm12 = vweird.f32 %v1640_v35 }
 0x2c6   : > { %v1133_v46 = vsel %vm1130_vm13, %v1132_v8, %v1128_v57  ;;  %vm1142_vm15 = vmor %vm1140_vm14, %vm1141_vm12 }
 0x2c7   : > { %v1137_v41 = vsub.f32 1.0, %v1136_v36  ;;  %v1164_v54 = vmul.f32 %v1133_v46, %v1882_v16 }
 0x2c9   : > { %v1138_v58 = vmul.f32 %v1640_v35, %v1137_v41 }
 0x2cb   : > { %v1139_v45 = vadd.f32 %v1640_v35, %v1138_v58 }
 0x2cd   : > { %v1143_v50 = vsel %vm1142_vm15, %v1640_v35, %v1139_v45 }
 0x2ce   : > { %v1148_v51 = vsel %vm1145_vm0, %v1147_v49, %v1143_v50 }
 0x2cf   : > { %v1165_v55 = vmul.f32 %v1148_v51, %v1884_v17 }
 0x2d1   : > { %v1173_v56 = vpack.c.bf16 %v1165_v55, %v1164_v54 }
 0x2d3   : > { %1285 = vmatmul.bf16.gmra.mxu0 %v1173_v56 }
 0x2e0   : > { %v1251_v16 = vpop.f32.mrf.mxu0 }
 0x2e1   : > { %v1252_v60 = vadd.f32 %v1576_v59, %v1251_v16 }
 0x2e3   : > { %1291 = vst [vmem:[%s2007_s18] sm:$0xff] %v1252_v60 }
 0x2e8   : > { %v1253_v17 = vpop.f32.mrf.mxu0 }
 0x2e9   : > { %v1254_v61 = vadd.f32 %v1576_v59, %v1253_v17 }
 0x2eb   : > { %1292 = vst [vmem:[%s2007_s18 + $0x8] sm:$0xff] %v1254_v61 }
 0x2f0   : > { %v1256_v0 = vpop.f32.mrf.mxu0 }
 0x2f1   : > { %v1257_v1 = vadd.f32 %v1576_v59, %v1256_v0 }
 0x2f3   : > { %1293 = vst [vmem:[%s2007_s18 + $0x10] sm:$0xff] %v1257_v1 }
 0x2f8   : > { %v1258_v42 = vpop.f32.mrf.mxu0 }
 0x2f9   : > { %v1259_v43 = vadd.f32 %v1576_v59, %v1258_v42 }
 0x2fb   : > { %1294 = vst [vmem:[%s2007_s18 + $0x18] sm:$0xff] %v1259_v43 }
 0x300   : > { %v1261_v2 = vpop.f32.mrf.mxu0 }
 0x301   : > { %v1262_v3 = vadd.f32 %v1576_v59, %v1261_v2 }
 0x303   : > { %1295 = vst [vmem:[%s2007_s18 + $0x20] sm:$0xff] %v1262_v3 }
 0x308   : > { %v1263_v4 = vpop.f32.mrf.mxu0 }
 0x309   : > { %v1264_v5 = vadd.f32 %v1576_v59, %v1263_v4 }
 0x30b   : > { %1296 = vst [vmem:[%s2007_s18 + $0x28] sm:$0xff] %v1264_v5 }
 0x310   : > { %v1266_v6 = vpop.f32.mrf.mxu0 }
 0x311   : > { %v1267_v9 = vadd.f32 %v1576_v59, %v1266_v6 }
 0x313   : > { %1297 = vst [vmem:[%s2007_s18 + $0x30] sm:$0xff] %v1267_v9 }
 0x318   : > { %v1268_v10 = vpop.f32.mrf.mxu0 }
 0x319   : > { %v1269_v11 = vadd.f32 %v1576_v59, %v1268_v10 }
 0x31b   : > { %1298 = vst [vmem:[%s2007_s18 + $0x38] sm:$0xff] %v1269_v11 }
 0x320   : > { %v1271_v52 = vpop.f32.mrf.mxu0 }
 0x321   : > { %v1272_v53 = vadd.f32 %v1576_v59, %v1271_v52 }
 0x323   : > { %1299 = vst [vmem:[%s2007_s18 + $0x40] sm:$0xff] %v1272_v53 }
 0x328   : > { %v1273_v12 = vpop.f32.mrf.mxu0 }
 0x329   : > { %v1274_v13 = vadd.f32 %v1576_v59, %v1273_v12 }
 0x32b   : > { %1300 = vst [vmem:[%s2007_s18 + $0x48] sm:$0xff] %v1274_v13 }
 0x330   : > { %v1276_v14 = vpop.f32.mrf.mxu0 }
 0x331   : > { %v1277_v15 = vadd.f32 %v1576_v59, %v1276_v14 }
 0x333   : > { %1301 = vst [vmem:[%s2007_s18 + $0x50] sm:$0xff] %v1277_v15 }
 0x338   : > { %v1278_v18 = vpop.f32.mrf.mxu0 }
 0x339   : > { %v1279_v19 = vadd.f32 %v1576_v59, %v1278_v18 }
 0x33b   : > { %1302 = vst [vmem:[%s2007_s18 + $0x58] sm:$0xff] %v1279_v19 }
 0x340   : > { %v1281_v62 = vpop.f32.mrf.mxu0 }
 0x341   : > { %v1282_v63 = vadd.f32 %v1576_v59, %v1281_v62 }
 0x343   : > { %1303 = vst [vmem:[%s2007_s18 + $0x60] sm:$0xff] %v1282_v63 }
 0x348   : > { %v1283_v20 = vpop.f32.mrf.mxu0 }
 0x349   : > { %v1284_v21 = vadd.f32 %v1576_v59, %v1283_v20 }
 0x34b   : > { %1304 = vst [vmem:[%s2007_s18 + $0x68] sm:$0xff] %v1284_v21 }
 0x350   : > { %v1286_v22 = vpop.f32.mrf.mxu0 }
 0x351   : > { %v1287_v23 = vadd.f32 %v1576_v59, %v1286_v22 }
 0x353   : > { %1305 = vst [vmem:[%s2007_s18 + $0x70] sm:$0xff] %v1287_v23 }
 0x358   : > { %v1288_v38 = vpop.f32.mrf.mxu0 }
 0x359   : > { %v1289_v39 = vadd.f32 %v1576_v59, %v1288_v38 }
 0x35b   : > { %1306 = vst [vmem:[%s2007_s18 + $0x78] sm:$0xff] %v1289_v39 }
 0x35c PF: > { %s19_s30 = sadd.s32 1, %s1647_s30  }
 0x35d   : > { %p16_p4 = scmp.ge.s32.totalorder %s19_s30, 4  }
 0x35f   :  { %18 = sbr.rel (!%p16_p4) target bundleno = 1 (0x1), region = 86 }

</bundles_post_ra>
